<compile_context>
chip_gen: v6e
topology: v6e:2x2x1
jax: 0.10.0
libtpu: 0.0.40
codegen_flags: <defaults>
</compile_context>

<pallas_src>
import numpy as np
import jax
import jax.numpy as jnp
from jax.experimental import pallas as pl
from jax.experimental.pallas import tpu as pltpu


def next_multiply(x, base):
    return type(x)(np.ceil(x / base) * base)


def _round_up(x, m):
    return ((x + m - 1) // m) * m


# ----------------------------- Pallas kernel ------------------------------ #

def _weightlayer_kernel(x_ref, w_ref, o_ref):
    # x_ref: (Cin, TM)   pixels on the lane axis
    # w_ref: (Cout, Cin) dense block-diagonal grouped-conv weight
    #                    (pre-sliced to target_params output channels)
    # o_ref: (Cout, TM)
    o_ref[...] = jnp.dot(
        w_ref[...], x_ref[...], preferred_element_type=jnp.float32
    ).astype(o_ref.dtype)


def _pixelwise_matmul(x, w_t, tile_m):
    """x: (B, Cin, M) with M % tile_m == 0, w_t: (Cout, Cin) -> (B, Cout, M)."""
    B, Cin, M = x.shape
    Cout = w_t.shape[0]
    assert M % tile_m == 0  # guaranteed by wrapper padding

    return pl.pallas_call(
        _weightlayer_kernel,
        out_shape=jax.ShapeDtypeStruct((B, Cout, M), x.dtype),
        grid_spec=pltpu.PrefetchScalarGridSpec(
            num_scalar_prefetch=0,
            grid=(B, M // tile_m),
            in_specs=[
                pl.BlockSpec((pl.Squeezed(), Cin, tile_m), lambda b, i: (b, 0, i)),
                pl.BlockSpec((Cout, Cin), lambda b, i: (0, 0)),
            ],
            out_specs=pl.BlockSpec((pl.Squeezed(), Cout, tile_m),
                                   lambda b, i: (b, 0, i)),
        ),
        compiler_params=pltpu.CompilerParams(
            dimension_semantics=("parallel", "parallel"),
        ),
    )(x, w_t)


def _choose_pixel_tiling(m_pix, cin, cout, dtype_bytes,
                         vmem_budget=12 * 1024 * 1024, max_tile=32768):
    """Pick (tile_m, m_pad) : lane-tile size + padded pixel count.

    Keeps double-buffered (input tile + output tile) under `vmem_budget`,
    caps the lane width at `max_tile`, and bounds the total pixel padding to
    < n_tiles * 128 elements.
    """
    per_lane = (cin + cout) * dtype_bytes * 2          # 2x: double buffering
    cap = max(128, (vmem_budget // per_lane) // 128 * 128)
    cap = min(cap, max_tile)
    m128 = _round_up(m_pix, 128)
    n_tiles = -(-m128 // cap)                          # ceil
    tile_m = _round_up(-(-m128 // n_tiles), 128)       # minimal 128-mult cover
    return tile_m, tile_m * n_tiles


# ------------------------------ WeightLayer ------------------------------- #

class WeightLayer:
    """JAX/Pallas port of mmseg's WeightLayer."""

    def __init__(self, target_params):
        self.target_params = target_params
        self.signal_channels = None
        self.signal_index = None
        self.groups = None
        self.weight_channels = None
        self.conv_weight = None      # (weight_channels, signal_channels//groups, 1, 1)
        self._wt_dense = None        # cached (target_params, signal_channels)

    def init_signal2weights(self, signal_channels, signal_index=0, groups=1, key=None):
        assert signal_channels % groups == 0, (
            "signal_channels must be divisible by groups (Conv2d constraint)")
        self.signal_channels = signal_channels
        self.signal_index = signal_index
        self.groups = groups
        self.weight_channels = next_multiply(self.target_params, groups)
        cin_g = signal_channels // groups
        if key is None:
            key = jax.random.PRNGKey(0)
        # Deterministic synthetic Conv2d weight (no bias), PyTorch layout
        # (out_channels, in_channels_per_group, 1, 1).
        self.conv_weight = 0.1 * jax.random.normal(
            key, (self.weight_channels, cin_g, 1, 1), dtype=jnp.float32)
        # Precompute + cache the dense block-diagonal weight in the (Cout, Cin)
        # compute layout, pre-sliced to target_params rows so the kernel writes
        # exactly the channels the module returns.  Off-group entries are zero
        # -> bit-exact with the grouped conv for finite inputs.
        cout_g = self.weight_channels // groups
        w_t = jnp.zeros((self.weight_channels, signal_channels), jnp.float32)
        for gi in range(groups):
            blk = self.conv_weight[gi * cout_g:(gi + 1) * cout_g, :, 0, 0]  # (cout_g, cin_g)
            w_t = w_t.at[gi * cout_g:(gi + 1) * cout_g,
                         gi * cin_g:(gi + 1) * cin_g].set(blk)
        self._wt_dense = w_t[:self.target_params]            # (target_params, Csig)

    def __call__(self, s):
        # s: NCHW (B, C, H, W), matching the PyTorch module.
        if self.conv_weight is None:
            return s
        B, C, H, W = s.shape
        si, sc = self.signal_index, self.signal_channels

        # Channel slice + pure reshape view (no transpose): (B, Csig, H*W).
        x = jax.lax.slice_in_dim(s, si, si + sc, axis=1).reshape(B, sc, H * W)
        w = self._wt_dense.astype(x.dtype)

        m_pix = H * W
        tile_m, m_pad = _choose_pixel_tiling(
            m_pix, sc, self.target_params, jnp.dtype(x.dtype).itemsize)
        if m_pad != m_pix:
            # Pad pixel axis so every tile is full; padded pixels dropped below.
            x = jnp.pad(x, ((0, 0), (0, 0), (0, m_pad - m_pix)))

        y = _pixelwise_matmul(x, w, tile_m)                   # (B, target_params, m_pad)
        if m_pad != m_pix:
            y = y[..., :m_pix]
        return y.reshape(B, self.target_params, H, W)


# -------------------------------- main ------------------------------------ #

if __name__ == "__main__":
    key = jax.random.PRNGKey(0)
    k_in, k_w = jax.random.split(key)

    # Small shapes consistent with the module's forward.
    B, C, Hh, Ww = 2, 6, 16, 16          # input signal s (NCHW)
    target_params = 9
    signal_channels = 4
    signal_index = 1
    groups = 2                            # -> weight_channels = 10, kernel writes only 9

    s = jax.random.normal(k_in, (B, C, Hh, Ww), dtype=jnp.float32)

    layer = WeightLayer(target_params)
    layer.init_signal2weights(signal_channels, signal_index=signal_index,
                              groups=groups, key=k_w)

    out = layer(s)
    out = jax.block_until_ready(out)
    assert out.shape == (B, target_params, Hh, Ww), out.shape

    # Reference: grouped 1x1 conv via lax, then channel slice.
    x_sl = s[:, signal_index:signal_index + signal_channels]
    ref = jax.lax.conv_general_dilated(
        x_sl, layer.conv_weight, window_strides=(1, 1), padding="VALID",
        dimension_numbers=("NCHW", "OIHW", "NCHW"),
        feature_group_count=groups,
    )[:, :target_params]
    np.testing.assert_allclose(np.asarray(out), np.asarray(ref), rtol=1e-5, atol=1e-5)

    print("KERNEL_OK")
</pallas_src>

<mosaic_0001>
module attributes {stable_mosaic.version = 11 : i64} {
  func.func @_weightlayer_kernel(%arg0: i32, %arg1: i32, %arg2: memref<1x4x256xf32, #tpu.memory_space<vmem>>, %arg3: memref<9x4xf32, #tpu.memory_space<vmem>>, %arg4: memref<1x9x256xf32, #tpu.memory_space<vmem>>) attributes {dimension_semantics = [#tpu.dimension_semantics<parallel>, #tpu.dimension_semantics<parallel>], iteration_bounds = array<i64: 2, 1>, scalar_prefetch = 0 : i64, scratch_operands = 0 : i64, tpu.core_type = #tpu.core_type<tc>, window_params = [{transform_indices = @transform_0, window_bounds = array<i64: 1, 4, 256>}, {pipeline_mode = #tpu.pipeline_mode<synchronous>, transform_indices = @transform_1, window_bounds = array<i64: 9, 4>}, {transform_indices = @transform_2, window_bounds = array<i64: 1, 9, 256>}]} {
    %c0 = arith.constant 0 : index
    %c0_0 = arith.constant 0 : index
    %0 = vector.load %arg3[%c0, %c0_0] : memref<9x4xf32, #tpu.memory_space<vmem>>, vector<9x4xf32>
    %c0_1 = arith.constant 0 : index
    %c0_2 = arith.constant 0 : index
    %c0_3 = arith.constant 0 : index
    %1 = vector.load %arg2[%c0_1, %c0_2, %c0_3] : memref<1x4x256xf32, #tpu.memory_space<vmem>>, vector<1x4x256xf32>
    %2 = vector.shape_cast %1 : vector<1x4x256xf32> to vector<4x256xf32>
    %cst = arith.constant dense<0.000000e+00> : vector<9x256xf32>
    %3 = tpu.matmul %0, %2, %cst {dimension_numbers = #tpu.dot_dimension_numbers<[1], [0], [0], [1], [0, 0, 1, 1], [], []>} : vector<9x4xf32>, vector<4x256xf32>, vector<9x256xf32> -> vector<9x256xf32>
    %c0_4 = arith.constant 0 : index
    %c0_5 = arith.constant 0 : index
    %c0_6 = arith.constant 0 : index
    %4 = vector.load %arg4[%c0_4, %c0_5, %c0_6] : memref<1x9x256xf32, #tpu.memory_space<vmem>>, vector<1x9x256xf32>
    %5 = vector.shape_cast %4 : vector<1x9x256xf32> to vector<9x256xf32>
    %6 = vector.shape_cast %3 : vector<9x256xf32> to vector<1x9x256xf32>
    tpu.vector_store %arg4[%c0_4, %c0_5, %c0_6], %6 {strides = array<i32>} : memref<1x9x256xf32, #tpu.memory_space<vmem>>, vector<1x9x256xf32>,
    return
  }
  func.func @transform_0(%arg0: i32, %arg1: i32) -> (i32, i32, i32) {
    %c0_i32 = arith.constant 0 : i32
    %c0_i32_0 = arith.constant 0 : i32
    return %arg0, %c0_i32, %arg1 : i32, i32, i32
  }
  func.func @transform_1(%arg0: i32, %arg1: i32) -> (i32, i32) {
    %c0_i32 = arith.constant 0 : i32
    %c0_i32_0 = arith.constant 0 : i32
    %c0_i32_1 = arith.constant 0 : i32
    return %c0_i32, %c0_i32_0 : i32, i32
  }
  func.func @transform_2(%arg0: i32, %arg1: i32) -> (i32, i32, i32) {
    %c0_i32 = arith.constant 0 : i32
    %c0_i32_0 = arith.constant 0 : i32
    return %arg0, %c0_i32, %arg1 : i32, i32, i32
  }
}

</mosaic_0001>

<bundles_post_ra>
// kernel: tpu_custom_call.1
= control target key start
LH: loop header
LB: loop body
LE: loop exit
PB: predicated region body
PF: predicated region fallthrough
CT: control target
= control target key end

     0   :  { %s453_s9 = smov 0   ;;  %s455_s10 = smov 0   ;;  %s492_s0 = inlined_call_operand.vmem [shape: f32[2,4,256], index: 0, kind: input, shape index: {}]   ;;  %s493_s1 = inlined_call_operand.vmem [shape: f32[9,4], index: 1, kind: input, shape index: {}]   ;;  %s494_s2 = inlined_call_operand.vmem [shape: f32[2,9,256], index: 2, kind: output, shape index: {}]  }
   0x1   :  { %s457_s11 = smov 0  }
   0x2 LB: > { %s24_s12 = sadd.s32 1, %s431_s10  ;;  %p372_p0 = scmp.ge.s32.totalorder %s435_s11, 1  ;;  %s435_s11 = sphi %s457_s11, %s12_s11   ;;  %s431_s10 = sphi %s455_s10, %s496_s10   ;;  %s427_s9 = sphi %s453_s9, %s495_s9  }
   0x3   : > { %p26_p1 = scmp.ge.s32.totalorder %s24_s12, 2  ;;  %p133_p2 = scmp.lt.s32.totalorder %s435_s11, 3 }
   0x5   : > { %s498_s12 = smov (%p26_p1, %s24_s12), 0  ;;  %p134_p3 = pnand %p372_p0, %p133_p2 }
   0x6   : > { %p164_p4 = scmp.lt.s32.totalorder (!%p134_p3), %s427_s9, 1 }
   0x7   : > { %137 = sbr.rel (%p134_p3) target bundleno = 216 (0xd8), region = 28 }
   0xc   : > { %v437_v0 = vmov 0.0   ;;  %s500_s9 = smov (!%p164_p4, %s427_s9), 1  ;;  %vm195_vm0 = vcmask 1043456   ;;  %v183_v3 = vld [vmem:[%s493_s1] sm:$0xff]  ;;  %vm188_vm1 = vcmask 31744  }
   0xd   : > { %264 = vmatprep.mubr.f32.mxu0 %v437_v0  ;;  %270 = vmatprep.mubr.f32.mxu1 %v437_v0  ;;  %s383_s13 = sshll.u32 %s500_s9, 3  ;;  %v184_v4 = vld [vmem:[%s493_s1 + $0x8] sm:$0x1]  ;;  %s384_s21 = sshll.u32 %s500_s9, 5 }
   0xe   : > { %s171_s16 = scalar_lea.vmem %s492_s0, %s383_s13  ;;  %s181_s24 = scalar_lea.vmem %s494_s2, %s384_s21 }
   0xf   : > { %v185_v1 = vld [vmem:[%s171_s16] sm:$0xff] }
  0x10   : > { %v187_v2 = vcombine.high %v185_v1, %v185_v1 }
  0x12   : > { %377 = vmatprep.subr.msk.mxu0 %vm195_vm0, %v187_v2  ;;  %385 = vmatprep.subr.msk.mxu1 %vm195_vm0, %v187_v2 }
  0x13   : > { %378 = vmatpush1.msk.msra.mxu0 %vm195_vm0, %v185_v1  ;;  %386 = vmatpush1.msk.msra.mxu1 %vm195_vm0, %v185_v1 }
  0x14   : > { %379 = vmatmul.mubr.msk.f32.vlgmr.msra.gmra.mxu0 %vm188_vm1, %v183_v3  ;;  %380 = vmatmul.mubr.msk.f32.vlgmr.msra.gmra.mxu1 %vm188_vm1, %v184_v4 }
  0xd4   : > { %v266_v5 = vpop.f32.mrf.mxu0  ;;  %v272_v6 = vpop.f32.mrf.mxu1 }
  0xd5   : > { %277 = vst [vmem:[%s181_s24] sm:$0xff] %v266_v5  ;;  %279 = vst [vmem:[%s181_s24 + $0x10] sm:$0x1] %v272_v6 }
  0xd6   : > { %v268_v7 = vpop.f32.mrf.mxu0  ;;  %v274_v8 = vpop.f32.mrf.mxu1 }
  0xd7   : > { %278 = vst [vmem:[%s181_s24 + $0x8] sm:$0xff] %v268_v7  ;;  %280 = vst [vmem:[%s181_s24 + $0x18] sm:$0x1] %v274_v8 }
  0xd8 PF: > { %s12_s11 = sadd.s32 1, %s435_s11   ;;  %s495_s9 = smov %s431_s10 }
  0xd9   : > { %p9_p5 = scmp.ge.s32.totalorder %s12_s11, 4   ;;  %s496_s10 = smov %s498_s12 }
  0xdb   :  { %11 = sbr.rel (!%p9_p5) target bundleno = 2 (0x2), region = 58 }

</bundles_post_ra>
